<compile_context>
chip_gen: v7x
topology: tpu7x:2x2x1
jax: 0.10.0
libtpu: 0.0.40
codegen_flags: <defaults>
</compile_context>

<pallas_src>
import math
from functools import partial

import jax
import jax.numpy as jnp
from jax import lax
from jax.experimental import pallas as pl
from jax.experimental.pallas import tpu as pltpu


# ---------------------------------------------------------------------------
# Fused kernel: one (image-slab, Cout-block) grid step.
#   x_ref : (Cin, L)   slab of whole images, spatial flattened onto lanes
#   refs  : folded   -> (weff(TCO,Cin), wdw(kh*kw,TCO,1), bias(TCO,1),
#                        row(1,L), col(1,L), o(TCO,L))
#           unfolded -> (w1(MID,Cin), w2(TCO,MID), wdw, bias, row, col, o)
# ---------------------------------------------------------------------------
def _bsconv_fused_kernel(x_ref, *refs, folded, use_mxu, kh, kw, ph, pw, h, w):
    if folded:
        weff_ref, wdw_ref, bias_ref, row_ref, col_ref, o_ref = refs
    else:
        w1_ref, w2_ref, wdw_ref, bias_ref, row_ref, col_ref, o_ref = refs

    L = x_ref.shape[-1]
    f32 = jnp.float32

    # ---- fused pointwise: pw2(pw1(x)) --------------------------------------
    if folded and not use_mxu:
        # Tiny channel counts: Cin broadcast-FMAs on the VPU (an MXU pass with
        # M=Cout<=16, K=Cin<=16 would be nearly empty). f32 VPU math (v5e-safe).
        x = x_ref[...].astype(f32)                          # (Cin, L)
        weff = weff_ref[...].astype(f32)                    # (TCO, Cin)
        ys = weff[:, 0:1] * x[0:1, :]
        for c in range(1, x.shape[0]):
            ys = ys + weff[:, c:c + 1] * x[c:c + 1, :]
    elif folded:
        ys = jnp.dot(weff_ref[...], x_ref[...],
                     preferred_element_type=f32)            # (TCO, L)
    else:
        ymid = jnp.dot(w1_ref[...], x_ref[...],
                       preferred_element_type=f32)          # (MID, L)
        ys = jnp.dot(w2_ref[...], ymid.astype(w2_ref.dtype),
                     preferred_element_type=f32)            # (TCO, L)

    # ---- depthwise KxK on the stride-1 'same' grid (lane rolls + masks) ----
    row = row_ref[...]                                      # (1, L) int32
    col = col_ref[...]
    acc = None
    for t in range(kh * kw):
        ih, iw = divmod(t, kw)
        dr, dc = ih - ph, iw - pw
        d = dr * w + dc                                     # flat lane offset
        wtap = wdw_ref[t].astype(f32)                       # (TCO, 1)
        if d == 0:
            contrib = ys                                    # center tap
        else:
            contrib = pltpu.roll(ys, shift=(-d) % L, axis=1)
            # Border-validity mask from per-lane (row, col); it also zeroes
            # lanes rolled in across image boundaries inside the packed slab.
            conds = []
            if dr > 0:
                conds.append(row < (h - dr))
            elif dr < 0:
                conds.append(row >= (-dr))
            if dc > 0:
                conds.append(col < (w - dc))
            elif dc < 0:
                conds.append(col >= (-dc))
            m = conds[0]
            for extra in conds[1:]:
                m = jnp.logical_and(m, extra)
            contrib = contrib * m.astype(f32)               # (1,L) sublane bcast
        term = contrib * wtap                               # (TCO,1) lane bcast
        acc = term if acc is None else acc + term
    acc = acc + bias_ref[...].astype(f32)
    o_ref[...] = acc.astype(o_ref.dtype)


# ---------------------------------------------------------------------------
# BSConv2dS forward (NCHW in / NCHW out, matching the PyTorch module).
#   w_pw1: (Cmid, Cin)    == pw1.weight[:, :, 0, 0]
#   w_pw2: (Cout, Cmid)   == pw2.weight[:, :, 0, 0]
#   w_dw : (Cout, kh, kw) == dw.weight[:, 0]
#   b_dw : (Cout,) or None
# ---------------------------------------------------------------------------
def bsconv2d_s(x_nchw, w_pw1, w_pw2, w_dw, b_dw=None, *, stride=(1, 1),
               padding=None, mxu_dtype=jnp.bfloat16):
    n, cin, h, w = x_nchw.shape
    cout, kh, kw = w_dw.shape
    mid = w_pw1.shape[0]
    sh, sw = (stride, stride) if isinstance(stride, int) else stride
    if padding is None:
        padding = ((kh - 1) // 2, (kw - 1) // 2)
    ph, pw_ = (padding, padding) if isinstance(padding, int) else padding
    assert 2 * ph == kh - 1 and 2 * pw_ == kw - 1, (
        "fused BSConv kernel requires an odd kernel with 'same' padding (k-1)//2")

    f32 = jnp.float32
    hw = h * w
    hw_pad = pl.cdiv(hw, 128) * 128                 # lane-align every image

    # ---- image-slab packing: whole images on the lane axis -----------------
    TARGET_LANES = 4096       # per-step slab width to aim for
    MIN_SPLIT_LANES = 2048    # only keep >=2 slabs (2 TCs on v7x) if each slab
                              # still amortizes the ~0.35us/step overhead
    divisors = [d for d in range(1, n + 1) if n % d == 0]
    fits = [d for d in divisors if d * hw_pad <= TARGET_LANES] or [1]
    g = max(fits)
    if n // g == 1:
        half = max((d for d in fits if n // d >= 2), default=None)
        if half is not None and half * hw_pad >= MIN_SPLIT_LANES:
            g = half
    imgs_per_slab = g
    n_slabs = n // imgs_per_slab
    l_slab = imgs_per_slab * hw_pad

    # ---- Cout blocking (match the MXU M-width on big layers) ---------------
    if cout <= 256:
        tco = cout
    elif cout % 256 == 0:
        tco = 256            # v6e/v7x MXU is 256-wide; v5e just splits M
    elif cout % 128 == 0:
        tco = 128
    else:
        tco = cout           # TODO(synk): ragged Cout blocking
    n_cb = cout // tco

    # ---- pointwise-weight folding decision (MXU FLOPs) ---------------------
    folded = (cout * cin) <= (mid * (cin + cout))
    small_ch = folded and cin <= 16 and cout <= 16      # VPU pointwise path
    use_mxu = not small_ch

    # ---- operand prep: bf16 MXU feeds; x packed as (Cin, N*HWpad) -----------
    x_flat = x_nchw.reshape(n, cin, hw)
    if hw_pad != hw:
        x_flat = jnp.pad(x_flat, ((0, 0), (0, 0), (0, hw_pad - hw)))
    x_packed = x_flat.transpose(1, 0, 2).reshape(cin, n * hw_pad)
    x_op = x_packed.astype(mxu_dtype) if use_mxu else x_packed

    if folded:
        weff = jnp.dot(w_pw2.astype(f32), w_pw1.astype(f32))        # (Cout, Cin)
        w_args = (weff.astype(mxu_dtype) if use_mxu else weff,)
        w_specs = [pl.BlockSpec((tco, cin), lambda s, c: (c, 0))]
    else:
        w_args = (w_pw1.astype(mxu_dtype), w_pw2.astype(mxu_dtype))
        w_specs = [pl.BlockSpec((mid, cin), lambda s, c: (0, 0)),
                   pl.BlockSpec((tco, mid), lambda s, c: (c, 0))]

    wdw_k = jnp.transpose(w_dw, (1, 2, 0)).reshape(kh * kw, cout, 1).astype(f32)
    if b_dw is None:
        b_dw = jnp.zeros((cout,), f32)
    bias_k = b_dw.reshape(cout, 1).astype(f32)

    # per-lane (row, col) indices: 2 tiny int32 vectors replace kh*kw f32 masks
    lane = jnp.arange(n * hw_pad, dtype=jnp.int32)
    p_in_img = lane % hw_pad
    row_idx = (p_in_img // w).reshape(1, -1)
    col_idx = (p_in_img % w).reshape(1, -1)

    # ---- VMEM budget from the actual block footprint -----------------------
    xb = jnp.dtype(x_op.dtype).itemsize
    ob = jnp.dtype(x_nchw.dtype).itemsize
    est = (2 * cin * l_slab * xb            # x slab (double-buffered)
           + 2 * tco * l_slab * ob          # output slab (double-buffered)
           + 2 * 2 * l_slab * 4             # row/col index vectors
           + 4 * tco * l_slab * 4           # ys / rolled / masked / acc f32 temps
           + (0 if folded else mid * l_slab * 4)
           + 4 * (kh * kw + 2) * cout * 8)  # small weight blocks
    vmem_limit = int(min(max(2 * est, 32 * 2**20), 128 * 2**20))

    kern = partial(_bsconv_fused_kernel, folded=folded, use_mxu=use_mxu,
                   kh=kh, kw=kw, ph=ph, pw=pw_, h=h, w=w)
    y_flat = pl.pallas_call(
        kern,
        out_shape=jax.ShapeDtypeStruct((cout, n * hw_pad), x_nchw.dtype),
        grid_spec=pltpu.PrefetchScalarGridSpec(
            num_scalar_prefetch=0,
            grid=(n_slabs, n_cb),            # image-slab outer, Cout-block inner
            in_specs=[
                pl.BlockSpec((cin, l_slab), lambda s, c: (0, s)),
                *w_specs,
                pl.BlockSpec((kh * kw, tco, 1), lambda s, c: (0, c, 0)),
                pl.BlockSpec((tco, 1), lambda s, c: (c, 0)),
                pl.BlockSpec((1, l_slab), lambda s, c: (0, s)),
                pl.BlockSpec((1, l_slab), lambda s, c: (0, s)),
            ],
            out_specs=pl.BlockSpec((tco, l_slab), lambda s, c: (c, s)),
        ),
        compiler_params=pltpu.CompilerParams(
            dimension_semantics=("parallel", "parallel"),
            vmem_limit_bytes=vmem_limit),
    )(x_op, *w_args, wdw_k, bias_k, row_idx, col_idx)

    # unpack (Cout, N*HWpad) -> (N, Cout, H, W)
    y = y_flat.reshape(cout, n, hw_pad)[:, :, :hw]
    y = y.transpose(1, 0, 2).reshape(n, cout, h, w)
    if (sh, sw) != (1, 1):
        # Exact: strided depthwise == stride-1 'same' depthwise, subsampled.
        y = y[:, :, ::sh, ::sw]
    return y


# ---------------------------------------------------------------------------
# Parameter init (PyTorch-native layouts) and pure-JAX reference.
# ---------------------------------------------------------------------------
def init_params(key, in_channels, out_channels, kernel_size, p=0.25,
                min_mid_channels=4, dtype=jnp.float32):
    mid = min(in_channels, max(min_mid_channels, math.ceil(p * in_channels)))
    k1, k2, k3, k4 = jax.random.split(key, 4)
    b1 = 1.0 / math.sqrt(in_channels)
    w_pw1 = jax.random.uniform(k1, (mid, in_channels), dtype, -b1, b1)
    b2 = 1.0 / math.sqrt(mid)
    w_pw2 = jax.random.uniform(k2, (out_channels, mid), dtype, -b2, b2)
    kh = kw = kernel_size
    b3 = 1.0 / math.sqrt(kh * kw)      # fan_in per depthwise group = 1*kh*kw
    w_dw = jax.random.uniform(k3, (out_channels, kh, kw), dtype, -b3, b3)
    b_dw = jax.random.uniform(k4, (out_channels,), dtype, -b3, b3)
    return w_pw1, w_pw2, w_dw, b_dw


def bsconv2d_s_ref(x, w_pw1, w_pw2, w_dw, b_dw, *, stride=(1, 1), padding=(1, 1)):
    xf = x.astype(jnp.float32)
    y = jnp.einsum("nchw,mc->nmhw", xf, w_pw1.astype(jnp.float32))
    y = jnp.einsum("nmhw,om->nohw", y, w_pw2.astype(jnp.float32))
    cout, kh, kw = w_dw.shape
    y = lax.conv_general_dilated(
        y, w_dw.reshape(cout, 1, kh, kw).astype(jnp.float32),
        window_strides=stride,
        padding=[(padding[0], padding[0]), (padding[1], padding[1])],
        dimension_numbers=("NCHW", "OIHW", "NCHW"),
        feature_group_count=cout,
    )
    if b_dw is not None:
        y = y + b_dw.astype(jnp.float32)[None, :, None, None]
    return y.astype(x.dtype)


if __name__ == "__main__":
    bsconv = jax.jit(bsconv2d_s,
                     static_argnames=("stride", "padding", "mxu_dtype"))

    key = jax.random.PRNGKey(0)
    kx1, kp1, kx2, kp2 = jax.random.split(key, 4)

    # ---- config 1: demo shapes (in=4 -> mid=4 -> out=8, 3x3 dw) ------------
    # Tiny channels -> folded pointwise on the VPU path; whole batch in 1 slab.
    N, CIN, H, W, COUT, K = 2, 4, 16, 16, 8, 3
    x = jax.random.normal(kx1, (N, CIN, H, W), jnp.float32)
    w_pw1, w_pw2, w_dw, b_dw = init_params(kp1, CIN, COUT, K)

    out = jax.block_until_ready(
        bsconv(x, w_pw1, w_pw2, w_dw, b_dw, stride=(1, 1), padding=(1, 1),
               mxu_dtype=jnp.float32))
    ref = bsconv2d_s_ref(x, w_pw1, w_pw2, w_dw, b_dw,
                         stride=(1, 1), padding=(1, 1))
    assert out.shape == (N, COUT, H, W), out.shape
    assert float(jnp.max(jnp.abs(out - ref))) < 1e-4

    # strided variant (same fused kernel; wrapper subsample is exact)
    out_s = jax.block_until_ready(
        bsconv(x, w_pw1, w_pw2, w_dw, b_dw, stride=(2, 2), padding=(1, 1),
               mxu_dtype=jnp.float32))
    ref_s = bsconv2d_s_ref(x, w_pw1, w_pw2, w_dw, b_dw,
                           stride=(2, 2), padding=(1, 1))
    assert out_s.shape == ref_s.shape == (N, COUT, 8, 8), out_s.shape
    assert float(jnp.max(jnp.abs(out_s - ref_s))) < 1e-4

    # ---- config 2: bigger channels (chained MXU matmuls + lane padding) ----
    N2, CIN2, H2, W2, COUT2 = 1, 32, 8, 8, 48
    x2 = jax.random.normal(kx2, (N2, CIN2, H2, W2), jnp.float32)
    p1, p2, pd, pb = init_params(kp2, CIN2, COUT2, K)

    out2 = jax.block_until_ready(
        bsconv(x2, p1, p2, pd, pb, stride=(1, 1), padding=(1, 1),
               mxu_dtype=jnp.float32))
    ref2 = bsconv2d_s_ref(x2, p1, p2, pd, pb, stride=(1, 1), padding=(1, 1))
    assert out2.shape == (N2, COUT2, H2, W2), out2.shape
    assert float(jnp.max(jnp.abs(out2 - ref2))) < 2e-4

    # bf16 MXU operands (default) with f32 accumulation: looser tolerance.
    out3 = jax.block_until_ready(
        bsconv(x2, p1, p2, pd, pb, stride=(1, 1), padding=(1, 1)))
    assert float(jnp.max(jnp.abs(out3 - ref2))) < 5e-2

    print("KERNEL_OK")
</pallas_src>

<mosaic_0001>
module attributes {stable_mosaic.version = 11 : i64} {
  func.func @_bsconv_fused_kernel(%arg0: i32, %arg1: i32, %arg2: memref<4x512xf32, #tpu.memory_space<vmem>>, %arg3: memref<8x4xf32, #tpu.memory_space<vmem>>, %arg4: memref<9x8x1xf32, #tpu.memory_space<vmem>>, %arg5: memref<8x1xf32, #tpu.memory_space<vmem>>, %arg6: memref<1x512xi32, #tpu.memory_space<vmem>>, %arg7: memref<1x512xi32, #tpu.memory_space<vmem>>, %arg8: memref<8x512xf32, #tpu.memory_space<vmem>>) attributes {dimension_semantics = [#tpu.dimension_semantics<parallel>, #tpu.dimension_semantics<parallel>], iteration_bounds = array<i64: 1, 1>, scalar_prefetch = 0 : i64, scratch_operands = 0 : i64, tpu.core_type = #tpu.core_type<tc>, window_params = [{transform_indices = @transform_0, window_bounds = array<i64: 4, 512>}, {transform_indices = @transform_1, window_bounds = array<i64: 8, 4>}, {transform_indices = @transform_2, window_bounds = array<i64: 9, 8, 1>}, {transform_indices = @transform_3, window_bounds = array<i64: 8, 1>}, {transform_indices = @transform_4, window_bounds = array<i64: 1, 512>}, {transform_indices = @transform_5, window_bounds = array<i64: 1, 512>}, {transform_indices = @transform_6, window_bounds = array<i64: 8, 512>}]} {
    %c0 = arith.constant 0 : index
    %c0_0 = arith.constant 0 : index
    %0 = vector.load %arg2[%c0, %c0_0] : memref<4x512xf32, #tpu.memory_space<vmem>>, vector<4x512xf32>
    %c0_1 = arith.constant 0 : index
    %c0_2 = arith.constant 0 : index
    %1 = vector.load %arg3[%c0_1, %c0_2] : memref<8x4xf32, #tpu.memory_space<vmem>>, vector<8x4xf32>
    %2 = vector.extract_strided_slice %1 {offsets = [0, 0], sizes = [8, 1], strides = [1, 1]} : vector<8x4xf32> to vector<8x1xf32>
    %3 = vector.extract_strided_slice %0 {offsets = [0, 0], sizes = [1, 512], strides = [1, 1]} : vector<4x512xf32> to vector<1x512xf32>
    %4 = vector.broadcast %2 : vector<8x1xf32> to vector<8x512xf32>
    %5 = vector.broadcast %3 : vector<1x512xf32> to vector<8x512xf32>
    %6 = arith.mulf %4, %5 : vector<8x512xf32>
    %7 = vector.extract_strided_slice %1 {offsets = [0, 1], sizes = [8, 1], strides = [1, 1]} : vector<8x4xf32> to vector<8x1xf32>
    %8 = vector.extract_strided_slice %0 {offsets = [1, 0], sizes = [1, 512], strides = [1, 1]} : vector<4x512xf32> to vector<1x512xf32>
    %9 = vector.broadcast %7 : vector<8x1xf32> to vector<8x512xf32>
    %10 = vector.broadcast %8 : vector<1x512xf32> to vector<8x512xf32>
    %11 = arith.mulf %9, %10 : vector<8x512xf32>
    %12 = arith.addf %6, %11 : vector<8x512xf32>
    %13 = vector.extract_strided_slice %1 {offsets = [0, 2], sizes = [8, 1], strides = [1, 1]} : vector<8x4xf32> to vector<8x1xf32>
    %14 = vector.extract_strided_slice %0 {offsets = [2, 0], sizes = [1, 512], strides = [1, 1]} : vector<4x512xf32> to vector<1x512xf32>
    %15 = vector.broadcast %13 : vector<8x1xf32> to vector<8x512xf32>
    %16 = vector.broadcast %14 : vector<1x512xf32> to vector<8x512xf32>
    %17 = arith.mulf %15, %16 : vector<8x512xf32>
    %18 = arith.addf %12, %17 : vector<8x512xf32>
    %19 = vector.extract_strided_slice %1 {offsets = [0, 3], sizes = [8, 1], strides = [1, 1]} : vector<8x4xf32> to vector<8x1xf32>
    %20 = vector.extract_strided_slice %0 {offsets = [3, 0], sizes = [1, 512], strides = [1, 1]} : vector<4x512xf32> to vector<1x512xf32>
    %21 = vector.broadcast %19 : vector<8x1xf32> to vector<8x512xf32>
    %22 = vector.broadcast %20 : vector<1x512xf32> to vector<8x512xf32>
    %23 = arith.mulf %21, %22 : vector<8x512xf32>
    %24 = arith.addf %18, %23 : vector<8x512xf32>
    %c0_3 = arith.constant 0 : index
    %c0_4 = arith.constant 0 : index
    %25 = vector.load %arg6[%c0_3, %c0_4] : memref<1x512xi32, #tpu.memory_space<vmem>>, vector<1x512xi32>
    %c0_5 = arith.constant 0 : index
    %c0_6 = arith.constant 0 : index
    %26 = vector.load %arg7[%c0_5, %c0_6] : memref<1x512xi32, #tpu.memory_space<vmem>>, vector<1x512xi32>
    %c0_7 = arith.constant 0 : index
    %c0_8 = arith.constant 0 : index
    %c0_9 = arith.constant 0 : index
    %27 = vector.load %arg4[%c0_7, %c0_8, %c0_9] : memref<9x8x1xf32, #tpu.memory_space<vmem>>, vector<1x8x1xf32>
    %28 = vector.shape_cast %27 : vector<1x8x1xf32> to vector<8x1xf32>
    %c17_i32 = arith.constant 17 : i32
    %29 = tpu.dynamic_rotate %24 by %c17_i32 dim 1 : vector<8x512xf32>, i32 -> vector<8x512xf32>
    %c1_i32 = arith.constant 1 : i32
    %30 = vector.broadcast %c1_i32 : i32 to vector<1x512xi32>
    %31 = arith.cmpi sge, %25, %30 : vector<1x512xi32>
    %c1_i32_10 = arith.constant 1 : i32
    %32 = vector.broadcast %c1_i32_10 : i32 to vector<1x512xi32>
    %33 = arith.cmpi sge, %26, %32 : vector<1x512xi32>
    %34 = arith.andi %31, %33 : vector<1x512xi1>
    %35 = arith.extui %34 : vector<1x512xi1> to vector<1x512xi32>
    %36 = arith.sitofp %35 : vector<1x512xi32> to vector<1x512xf32>
    %37 = vector.broadcast %36 : vector<1x512xf32> to vector<8x512xf32>
    %38 = arith.mulf %29, %37 : vector<8x512xf32>
    %39 = vector.broadcast %28 : vector<8x1xf32> to vector<8x512xf32>
    %40 = arith.mulf %38, %39 : vector<8x512xf32>
    %c1 = arith.constant 1 : index
    %c0_11 = arith.constant 0 : index
    %c0_12 = arith.constant 0 : index
    %41 = vector.load %arg4[%c1, %c0_11, %c0_12] : memref<9x8x1xf32, #tpu.memory_space<vmem>>, vector<1x8x1xf32>
    %42 = vector.shape_cast %41 : vector<1x8x1xf32> to vector<8x1xf32>
    %c16_i32 = arith.constant 16 : i32
    %43 = tpu.dynamic_rotate %24 by %c16_i32 dim 1 : vector<8x512xf32>, i32 -> vector<8x512xf32>
    %c1_i32_13 = arith.constant 1 : i32
    %44 = vector.broadcast %c1_i32_13 : i32 to vector<1x512xi32>
    %45 = arith.cmpi sge, %25, %44 : vector<1x512xi32>
    %46 = arith.extui %45 : vector<1x512xi1> to vector<1x512xi32>
    %47 = arith.sitofp %46 : vector<1x512xi32> to vector<1x512xf32>
    %48 = vector.broadcast %47 : vector<1x512xf32> to vector<8x512xf32>
    %49 = arith.mulf %43, %48 : vector<8x512xf32>
    %50 = vector.broadcast %42 : vector<8x1xf32> to vector<8x512xf32>
    %51 = arith.mulf %49, %50 : vector<8x512xf32>
    %52 = arith.addf %40, %51 : vector<8x512xf32>
    %c2 = arith.constant 2 : index
    %c0_14 = arith.constant 0 : index
    %c0_15 = arith.constant 0 : index
    %53 = vector.load %arg4[%c2, %c0_14, %c0_15] : memref<9x8x1xf32, #tpu.memory_space<vmem>>, vector<1x8x1xf32>
    %54 = vector.shape_cast %53 : vector<1x8x1xf32> to vector<8x1xf32>
    %c15_i32 = arith.constant 15 : i32
    %55 = tpu.dynamic_rotate %24 by %c15_i32 dim 1 : vector<8x512xf32>, i32 -> vector<8x512xf32>
    %c1_i32_16 = arith.constant 1 : i32
    %56 = vector.broadcast %c1_i32_16 : i32 to vector<1x512xi32>
    %57 = arith.cmpi sge, %25, %56 : vector<1x512xi32>
    %c15_i32_17 = arith.constant 15 : i32
    %58 = vector.broadcast %c15_i32_17 : i32 to vector<1x512xi32>
    %59 = arith.cmpi slt, %26, %58 : vector<1x512xi32>
    %60 = arith.andi %57, %59 : vector<1x512xi1>
    %61 = arith.extui %60 : vector<1x512xi1> to vector<1x512xi32>
    %62 = arith.sitofp %61 : vector<1x512xi32> to vector<1x512xf32>
    %63 = vector.broadcast %62 : vector<1x512xf32> to vector<8x512xf32>
    %64 = arith.mulf %55, %63 : vector<8x512xf32>
    %65 = vector.broadcast %54 : vector<8x1xf32> to vector<8x512xf32>
    %66 = arith.mulf %64, %65 : vector<8x512xf32>
    %67 = arith.addf %52, %66 : vector<8x512xf32>
    %c3 = arith.constant 3 : index
    %c0_18 = arith.constant 0 : index
    %c0_19 = arith.constant 0 : index
    %68 = vector.load %arg4[%c3, %c0_18, %c0_19] : memref<9x8x1xf32, #tpu.memory_space<vmem>>, vector<1x8x1xf32>
    %69 = vector.shape_cast %68 : vector<1x8x1xf32> to vector<8x1xf32>
    %c1_i32_20 = arith.constant 1 : i32
    %70 = tpu.dynamic_rotate %24 by %c1_i32_20 dim 1 : vector<8x512xf32>, i32 -> vector<8x512xf32>
    %c1_i32_21 = arith.constant 1 : i32
    %71 = vector.broadcast %c1_i32_21 : i32 to vector<1x512xi32>
    %72 = arith.cmpi sge, %26, %71 : vector<1x512xi32>
    %73 = arith.extui %72 : vector<1x512xi1> to vector<1x512xi32>
    %74 = arith.sitofp %73 : vector<1x512xi32> to vector<1x512xf32>
    %75 = vector.broadcast %74 : vector<1x512xf32> to vector<8x512xf32>
    %76 = arith.mulf %70, %75 : vector<8x512xf32>
    %77 = vector.broadcast %69 : vector<8x1xf32> to vector<8x512xf32>
    %78 = arith.mulf %76, %77 : vector<8x512xf32>
    %79 = arith.addf %67, %78 : vector<8x512xf32>
    %c4 = arith.constant 4 : index
    %c0_22 = arith.constant 0 : index
    %c0_23 = arith.constant 0 : index
    %80 = vector.load %arg4[%c4, %c0_22, %c0_23] : memref<9x8x1xf32, #tpu.memory_space<vmem>>, vector<1x8x1xf32>
    %81 = vector.shape_cast %80 : vector<1x8x1xf32> to vector<8x1xf32>
    %82 = vector.broadcast %81 : vector<8x1xf32> to vector<8x512xf32>
    %83 = arith.mulf %24, %82 : vector<8x512xf32>
    %84 = arith.addf %79, %83 : vector<8x512xf32>
    %c5 = arith.constant 5 : index
    %c0_24 = arith.constant 0 : index
    %c0_25 = arith.constant 0 : index
    %85 = vector.load %arg4[%c5, %c0_24, %c0_25] : memref<9x8x1xf32, #tpu.memory_space<vmem>>, vector<1x8x1xf32>
    %86 = vector.shape_cast %85 : vector<1x8x1xf32> to vector<8x1xf32>
    %c511_i32 = arith.constant 511 : i32
    %87 = tpu.dynamic_rotate %24 by %c511_i32 dim 1 : vector<8x512xf32>, i32 -> vector<8x512xf32>
    %c15_i32_26 = arith.constant 15 : i32
    %88 = vector.broadcast %c15_i32_26 : i32 to vector<1x512xi32>
    %89 = arith.cmpi slt, %26, %88 : vector<1x512xi32>
    %90 = arith.extui %89 : vector<1x512xi1> to vector<1x512xi32>
    %91 = arith.sitofp %90 : vector<1x512xi32> to vector<1x512xf32>
    %92 = vector.broadcast %91 : vector<1x512xf32> to vector<8x512xf32>
    %93 = arith.mulf %87, %92 : vector<8x512xf32>
    %94 = vector.broadcast %86 : vector<8x1xf32> to vector<8x512xf32>
    %95 = arith.mulf %93, %94 : vector<8x512xf32>
    %96 = arith.addf %84, %95 : vector<8x512xf32>
    %c6 = arith.constant 6 : index
    %c0_27 = arith.constant 0 : index
    %c0_28 = arith.constant 0 : index
    %97 = vector.load %arg4[%c6, %c0_27, %c0_28] : memref<9x8x1xf32, #tpu.memory_space<vmem>>, vector<1x8x1xf32>
    %98 = vector.shape_cast %97 : vector<1x8x1xf32> to vector<8x1xf32>
    %c497_i32 = arith.constant 497 : i32
    %99 = tpu.dynamic_rotate %24 by %c497_i32 dim 1 : vector<8x512xf32>, i32 -> vector<8x512xf32>
    %c15_i32_29 = arith.constant 15 : i32
    %100 = vector.broadcast %c15_i32_29 : i32 to vector<1x512xi32>
    %101 = arith.cmpi slt, %25, %100 : vector<1x512xi32>
    %c1_i32_30 = arith.constant 1 : i32
    %102 = vector.broadcast %c1_i32_30 : i32 to vector<1x512xi32>
    %103 = arith.cmpi sge, %26, %102 : vector<1x512xi32>
    %104 = arith.andi %101, %103 : vector<1x512xi1>
    %105 = arith.extui %104 : vector<1x512xi1> to vector<1x512xi32>
    %106 = arith.sitofp %105 : vector<1x512xi32> to vector<1x512xf32>
    %107 = vector.broadcast %106 : vector<1x512xf32> to vector<8x512xf32>
    %108 = arith.mulf %99, %107 : vector<8x512xf32>
    %109 = vector.broadcast %98 : vector<8x1xf32> to vector<8x512xf32>
    %110 = arith.mulf %108, %109 : vector<8x512xf32>
    %111 = arith.addf %96, %110 : vector<8x512xf32>
    %c7 = arith.constant 7 : index
    %c0_31 = arith.constant 0 : index
    %c0_32 = arith.constant 0 : index
    %112 = vector.load %arg4[%c7, %c0_31, %c0_32] : memref<9x8x1xf32, #tpu.memory_space<vmem>>, vector<1x8x1xf32>
    %113 = vector.shape_cast %112 : vector<1x8x1xf32> to vector<8x1xf32>
    %c496_i32 = arith.constant 496 : i32
    %114 = tpu.dynamic_rotate %24 by %c496_i32 dim 1 : vector<8x512xf32>, i32 -> vector<8x512xf32>
    %c15_i32_33 = arith.constant 15 : i32
    %115 = vector.broadcast %c15_i32_33 : i32 to vector<1x512xi32>
    %116 = arith.cmpi slt, %25, %115 : vector<1x512xi32>
    %117 = arith.extui %116 : vector<1x512xi1> to vector<1x512xi32>
    %118 = arith.sitofp %117 : vector<1x512xi32> to vector<1x512xf32>
    %119 = vector.broadcast %118 : vector<1x512xf32> to vector<8x512xf32>
    %120 = arith.mulf %114, %119 : vector<8x512xf32>
    %121 = vector.broadcast %113 : vector<8x1xf32> to vector<8x512xf32>
    %122 = arith.mulf %120, %121 : vector<8x512xf32>
    %123 = arith.addf %111, %122 : vector<8x512xf32>
    %c8 = arith.constant 8 : index
    %c0_34 = arith.constant 0 : index
    %c0_35 = arith.constant 0 : index
    %124 = vector.load %arg4[%c8, %c0_34, %c0_35] : memref<9x8x1xf32, #tpu.memory_space<vmem>>, vector<1x8x1xf32>
    %125 = vector.shape_cast %124 : vector<1x8x1xf32> to vector<8x1xf32>
    %c495_i32 = arith.constant 495 : i32
    %126 = tpu.dynamic_rotate %24 by %c495_i32 dim 1 : vector<8x512xf32>, i32 -> vector<8x512xf32>
    %c15_i32_36 = arith.constant 15 : i32
    %127 = vector.broadcast %c15_i32_36 : i32 to vector<1x512xi32>
    %128 = arith.cmpi slt, %25, %127 : vector<1x512xi32>
    %c15_i32_37 = arith.constant 15 : i32
    %129 = vector.broadcast %c15_i32_37 : i32 to vector<1x512xi32>
    %130 = arith.cmpi slt, %26, %129 : vector<1x512xi32>
    %131 = arith.andi %128, %130 : vector<1x512xi1>
    %132 = arith.extui %131 : vector<1x512xi1> to vector<1x512xi32>
    %133 = arith.sitofp %132 : vector<1x512xi32> to vector<1x512xf32>
    %134 = vector.broadcast %133 : vector<1x512xf32> to vector<8x512xf32>
    %135 = arith.mulf %126, %134 : vector<8x512xf32>
    %136 = vector.broadcast %125 : vector<8x1xf32> to vector<8x512xf32>
    %137 = arith.mulf %135, %136 : vector<8x512xf32>
    %138 = arith.addf %123, %137 : vector<8x512xf32>
    %c0_38 = arith.constant 0 : index
    %c0_39 = arith.constant 0 : index
    %139 = vector.load %arg5[%c0_38, %c0_39] : memref<8x1xf32, #tpu.memory_space<vmem>>, vector<8x1xf32>
    %140 = vector.broadcast %139 : vector<8x1xf32> to vector<8x512xf32>
    %141 = arith.addf %138, %140 : vector<8x512xf32>
    %c0_40 = arith.constant 0 : index
    %c0_41 = arith.constant 0 : index
    %142 = vector.load %arg8[%c0_40, %c0_41] : memref<8x512xf32, #tpu.memory_space<vmem>>, vector<8x512xf32>
    tpu.vector_store %arg8[%c0_40, %c0_41], %141 {strides = array<i32>} : memref<8x512xf32, #tpu.memory_space<vmem>>, vector<8x512xf32>,
    return
  }
  func.func @transform_0(%arg0: i32, %arg1: i32) -> (i32, i32) {
    %c0_i32 = arith.constant 0 : i32
    %c0_i32_0 = arith.constant 0 : i32
    return %c0_i32, %arg0 : i32, i32
  }
  func.func @transform_1(%arg0: i32, %arg1: i32) -> (i32, i32) {
    %c0_i32 = arith.constant 0 : i32
    %c0_i32_0 = arith.constant 0 : i32
    return %arg1, %c0_i32 : i32, i32
  }
  func.func @transform_2(%arg0: i32, %arg1: i32) -> (i32, i32, i32) {
    %c0_i32 = arith.constant 0 : i32
    %c0_i32_0 = arith.constant 0 : i32
    %c0_i32_1 = arith.constant 0 : i32
    return %c0_i32, %arg1, %c0_i32_0 : i32, i32, i32
  }
  func.func @transform_3(%arg0: i32, %arg1: i32) -> (i32, i32) {
    %c0_i32 = arith.constant 0 : i32
    %c0_i32_0 = arith.constant 0 : i32
    return %arg1, %c0_i32 : i32, i32
  }
  func.func @transform_4(%arg0: i32, %arg1: i32) -> (i32, i32) {
    %c0_i32 = arith.constant 0 : i32
    %c0_i32_0 = arith.constant 0 : i32
    return %c0_i32, %arg0 : i32, i32
  }
  func.func @transform_5(%arg0: i32, %arg1: i32) -> (i32, i32) {
    %c0_i32 = arith.constant 0 : i32
    %c0_i32_0 = arith.constant 0 : i32
    return %c0_i32, %arg0 : i32, i32
  }
  func.func @transform_6(%arg0: i32, %arg1: i32) -> (i32, i32) {
    %c0_i32 = arith.constant 0 : i32
    return %arg1, %arg0 : i32, i32
  }
}

</mosaic_0001>

<bundles_post_ra>
// kernel: bsconv2d_s.1
= control target key start
LH: loop header
LB: loop body
LE: loop exit
PB: predicated region body
PF: predicated region fallthrough
CT: control target
= control target key end

     0   :  { %v732_v0 = vmov 0   ;;  %v733_v2 = vmov 2   ;;  %v734_v3 = vmov 1   ;;  %v735_v4 = vmov 3   ;;  %s738_s20 = smov 15   ;;  %s739_s21 = smov 1   ;;  %s1077_s1 = inlined_call_operand.vmem [shape: f32[8,4], index: 1, kind: input, shape index: {}]   ;;  %s1078_s2 = inlined_call_operand.vmem [shape: f32[9,8,1], index: 2, kind: input, shape index: {}]   ;;  %s1079_s0 = inlined_call_operand.vmem [shape: f32[4,512], index: 0, kind: input, shape index: {}]   ;;  %s1080_s3 = inlined_call_operand.vmem [shape: f32[8,1], index: 3, kind: input, shape index: {}]   ;;  %s1081_s4 = inlined_call_operand.vmem [shape: s32[1,512], index: 4, kind: input, shape index: {}]   ;;  %s1082_s5 = inlined_call_operand.vmem [shape: s32[1,512], index: 5, kind: input, shape index: {}]   ;;  %s1083_s6 = inlined_call_operand.vmem [shape: f32[8,512], index: 6, kind: output, shape index: {}]  }
   0x1   :  { %726 = vset.pattern.permute.xlu0 %v732_v0  ;;  %v25_v1 = vld [vmem:[%s1077_s1] sm:$0xff]  ;;  %728 = vset.pattern.permute.xlu1 %v733_v2  ;;  %v698_v5 = vld [vmem:[%s1078_s2 + $0x8] sm:$0xff]  ;;  %v700_v8 = vld [vmem:[%s1078_s2 + $0x10] sm:$0xff]  ;;  %v33_v14 = vlaneseq  ;;  %s740_s22 = smov 127   ;;  %s741_s23 = smov 113  }
   0x2   :  { %28 = vperm.xlu0 %726, %v25_v1   ;;  %122 = vperm.xlu1 %728, %v25_v1   ;;  %v219_v6 = vld [vmem:[%s1078_s2] sm:$0xff]  ;;  %v702_v9 = vld [vmem:[%s1078_s2 + $0x18] sm:$0xff]  ;;  %v707_v10 = vld [vmem:[%s1078_s2 + $0x30] sm:$0xff]  ;;  %s742_s24 = smov 112   ;;  %s743_s25 = smov 111  }
   0x3   :  { %v704_v7 = vld [vmem:[%s1078_s2 + $0x20] sm:$0xff]  ;;  %v705_v11 = vld [vmem:[%s1078_s2 + $0x28] sm:$0xff]  ;;  %v709_v13 = vld [vmem:[%s1078_s2 + $0x38] sm:$0xff]  ;;  %v34_v15 = vshrl.u32 %v33_v14, 7 }
   0x4   :  { %v711_v12 = vld [vmem:[%s1078_s2 + $0x40] sm:$0xff]  ;;  %v24_v20 = vld [vmem:[%s1079_s0 + $0x8] sm:$0xff]  ;;  %s737_s2 = smov 16  }
   0x5   :  { %v811_v16 = vsub.s32 0, %v34_v15  ;;  %v39_v17 = vsub.s32 4, %v34_v15  ;;  %v813_v18 = vsub.s32 2, %v34_v15  ;;  %v23_v19 = vld [vmem:[%s1079_s0] sm:$0xff]  ;;  %v131_v21 = vsub.s32 6, %v34_v15  ;;  %s736_s0 = smov 17  }
   0x6   :  { %727 = vset.pattern.permute.xlu0 %v734_v3  ;;  %729 = vset.pattern.permute.xlu1 %v735_v4  ;;  %v821_v22 = vsub.s32 1, %v34_v15  ;;  %v83_v23 = vsub.s32 5, %v34_v15  ;;  %v823_v24 = vsub.s32 3, %v34_v15  ;;  %v179_v25 = vsub.s32 7, %v34_v15 }
   0x7   :  { %74 = vperm.xlu0 %727, %v25_v1   ;;  %170 = vperm.xlu1 %729, %v25_v1   ;;  %v36_v26 = vrot.slane %v23_v19, %v811_v16  ;;  %v40_v27 = vrot.slane %v23_v19, %v39_v17  ;;  %v44_v28 = vrot.slane %v24_v20, %v811_v16 }
   0x8   :  { %v48_v29 = vrot.slane %v24_v20, %v39_v17  ;;  %v128_v30 = vrot.slane %v23_v19, %v813_v18  ;;  %v132_v31 = vrot.slane %v23_v19, %v131_v21  ;;  %v136_v32 = vrot.slane %v24_v20, %v813_v18 }
   0x9   :  { %v140_v33 = vrot.slane %v24_v20, %v131_v21  ;;  %v80_v34 = vrot.slane %v23_v19, %v821_v22  ;;  %v84_v35 = vrot.slane %v23_v19, %v83_v23  ;;  %v88_v36 = vrot.slane %v24_v20, %v821_v22 }
   0xa   :  { %v92_v37 = vrot.slane %v24_v20, %v83_v23  ;;  %v176_v38 = vrot.slane %v23_v19, %v823_v24  ;;  %v180_v39 = vrot.slane %v23_v19, %v179_v25  ;;  %v184_v40 = vrot.slane %v24_v20, %v823_v24 }
   0xb   :  { %731 = vset.pattern.permute.xlu0 %v732_v0  ;;  %730 = vset.pattern.permute.xlu1 %v732_v0  ;;  %v188_v41 = vrot.slane %v24_v20, %v179_v25  ;;  %v56_v43 = vrot.slane %v36_v26, %v811_v16  ;;  %v60_v44 = vrot.slane %v40_v27, %v811_v16 }
   0xc   :  { %318 = vperm.xlu0 %731, %v698_v5   ;;  %267 = vperm.xlu1 %730, %v219_v6   ;;  %v64_v45 = vrot.slane %v44_v28, %v811_v16  ;;  %v68_v46 = vrot.slane %v48_v29, %v811_v16  ;;  %v148_v48 = vrot.slane %v128_v30, %v813_v18 }
   0xd   :  { %v152_v49 = vrot.slane %v132_v31, %v813_v18  ;;  %v156_v50 = vrot.slane %v136_v32, %v813_v18  ;;  %v160_v51 = vrot.slane %v140_v33, %v813_v18  ;;  %v100_v52 = vrot.slane %v80_v34, %v821_v22 }
   0xe   :  { %v104_v53 = vrot.slane %v84_v35, %v821_v22  ;;  %v108_v54 = vrot.slane %v88_v36, %v821_v22  ;;  %v112_v55 = vrot.slane %v92_v37, %v821_v22  ;;  %v196_v56 = vrot.slane %v176_v38, %v823_v24  ;;  %v679_v37 = vld [vmem:[%s1080_s3] sm:$0xff] }
   0xf   :  { %v200_v57 = vrot.slane %v180_v39, %v823_v24  ;;  %v204_v58 = vrot.slane %v184_v40, %v823_v24  ;;  %v208_v59 = vrot.slane %v188_v41, %v823_v24 }
  0x10   :  { %445 = vperm.xlu0 %731, %v704_v7   ;;  %375 = vperm.xlu1 %730, %v700_v8  }
  0x14   :  { %430 = vperm.xlu1 %730, %v702_v9   ;;  %557 = vperm.xlu0 %731, %v707_v10  }
  0x18   :  { %500 = vperm.xlu1 %730, %v705_v11   ;;  %668 = vperm.xlu0 %731, %v711_v12  }
  0x1c   :  { %612 = vperm.xlu1 %730, %v709_v13  }
  0x81   :  { %v29_v42 = vpop.permute.xlu0 %28  ;;  %v123_v47 = vpop.permute.xlu1 %122 }
  0x82   :  { %v69_v60 = vmul.f32 %v56_v43, %v29_v42  ;;  %v70_v61 = vmul.f32 %v60_v44, %v29_v42  ;;  %v71_v62 = vmul.f32 %v64_v45, %v29_v42  ;;  %v72_v63 = vmul.f32 %v68_v46, %v29_v42  ;;  %v879_v45 = vld [vmem:[%s1081_s4] sm:$0xf] }
  0x83   :  { %v161_v0 = vmul.f32 %v148_v48, %v123_v47  ;;  %v162_v1 = vmul.f32 %v152_v49, %v123_v47  ;;  %v163_v2 = vmul.f32 %v156_v50, %v123_v47  ;;  %v164_v3 = vmul.f32 %v160_v51, %v123_v47  ;;  %v884_v46 = vld [vmem:[%s1082_s5] sm:$0xf] }
  0x84   :  { %vm235_vm0 = vcmp.ge.s32.totalorder %v879_v45, 1  ;;  %vm236_vm1 = vcmp.ge.s32.totalorder %v884_v46, 1  ;;  %v889_v49 = vand.u32 127, %v33_v14  ;;  %vm344_vm3 = vcmp.lt.s32.totalorder %v884_v46, 15 }
  0x85   :  { %vm237_vm2 = vmand %vm235_vm0, %vm236_vm1  ;;  %vm526_vm9 = vcmp.lt.s32.totalorder %v879_v45, 15 }
  0x86   :  { %v75_v4 = vpop.permute.xlu0 %74  ;;  %v171_v5 = vpop.permute.xlu1 %170  ;;  %vm284_vm4 = vcmp.lt.s32.totalorder %v889_v49, 16  ;;  %vm230_vm5 = vcmp.lt.s32.totalorder %v889_v49, 17  ;;  %vm345_vm6 = vmand %vm235_vm0, %vm344_vm3  ;;  %vm339_vm7 = vcmp.lt.s32.totalorder %v889_v49, 15  ;;  %vm396_vm8 = vcmp.lt.s32.totalorder %v889_v49, 1 }
  0x87   :  { %v113_v6 = vmul.f32 %v100_v52, %v75_v4  ;;  %v114_v7 = vmul.f32 %v104_v53, %v75_v4  ;;  %v115_v8 = vmul.f32 %v108_v54, %v75_v4  ;;  %v116_v9 = vmul.f32 %v112_v55, %v75_v4  ;;  %vm527_vm11 = vmand %vm526_vm9, %vm236_vm1 }
  0x88   :  { %v209_v10 = vmul.f32 %v196_v56, %v171_v5  ;;  %v210_v11 = vmul.f32 %v200_v57, %v171_v5  ;;  %v211_v12 = vmul.f32 %v204_v58, %v171_v5  ;;  %v212_v13 = vmul.f32 %v208_v59, %v171_v5  ;;  %vm638_vm14 = vmand %vm526_vm9, %vm344_vm3 }
  0x89   :  { %v117_v15 = vadd.f32 %v113_v6, %v69_v60  ;;  %v118_v17 = vadd.f32 %v114_v7, %v70_v61  ;;  %v119_v19 = vadd.f32 %v115_v8, %v71_v62  ;;  %v120_v20 = vadd.f32 %v116_v9, %v72_v63 }
  0x8a   :  { %v744_v52 = vmov 0.0   ;;  %vm466_vm10 = vcmp.lt.s32.totalorder %v889_v49, 127  ;;  %vm521_vm12 = vcmp.lt.s32.totalorder %v889_v49, 113  ;;  %vm578_vm13 = vcmp.lt.s32.totalorder %v889_v49, 112 }
  0x8b   :  { %v165_v21 = vadd.f32 %v161_v0, %v117_v15  ;;  %v166_v23 = vadd.f32 %v162_v1, %v118_v17  ;;  %v167_v25 = vadd.f32 %v163_v2, %v119_v19  ;;  %v168_v26 = vadd.f32 %v164_v3, %v120_v20  ;;  %v849_v27 = vpop.permute.xlu0 %318  ;;  %v862_v38 = vpop.permute.xlu1 %267 }
  0x8c   :  { %v699_v53 = vsel %vm235_vm0, 1.0, %v744_v52  ;;  %v697_v54 = vsel %vm237_vm2, 1.0, %v744_v52  ;;  %v701_v0 = vsel %vm345_vm6, 1.0, %v744_v52  ;;  %v712_v45 = vsel %vm638_vm14, 1.0, %v744_v52 }
  0x8d   :  { %v213_v28 = vadd.f32 %v209_v10, %v165_v21  ;;  %v214_v29 = vadd.f32 %v210_v11, %v166_v23  ;;  %v215_v30 = vadd.f32 %v211_v12, %v167_v25  ;;  %v216_v31 = vadd.f32 %v212_v13, %v168_v26 }
  0x8e   :  { %v299_v55 = vrot.slane %v699_v53, %v821_v22  ;;  %v248_v58 = vrot.slane %v697_v54, %v821_v22  ;;  %v244_v59 = vrot.slane %v697_v54, %v811_v16  ;;  %v252_v60 = vrot.slane %v697_v54, %v813_v18 }
  0x8f   :  { %v446_v32 = vpop.permute.xlu0 %445  ;;  %222 = vrot.lane.b32.xlu0 %v214_v29, %s736_s0  ;;  %220 = vrot.lane.b32.xlu1 %v213_v28, %s736_s0  ;;  %v864_v39 = vpop.permute.xlu1 %375  ;;  %v303_v62 = vrot.slane %v699_v53, %v813_v18  ;;  %v295_v63 = vrot.slane %v699_v53, %v811_v16  ;;  %v256_v2 = vrot.slane %v697_v54, %v823_v24  ;;  %vm633_vm15 = vcmp.lt.s32.totalorder %v889_v49, 111 }
  0x90   :  { %v851_v33 = vmul.f32 %v446_v32, %v213_v28  ;;  %v853_v34 = vmul.f32 %v446_v32, %v214_v29  ;;  %v855_v35 = vmul.f32 %v446_v32, %v215_v30  ;;  %v857_v36 = vmul.f32 %v446_v32, %v216_v31 }
  0x91   :  { %v307_v5 = vrot.slane %v699_v53, %v823_v24  ;;  %v356_v13 = vrot.slane %v701_v0, %v821_v22  ;;  %v352_v32 = vrot.slane %v701_v0, %v811_v16 }
  0x93   :  { %226 = vrot.lane.b32.xlu0 %v216_v31, %s736_s0  ;;  %224 = vrot.lane.b32.xlu1 %v215_v30, %s736_s0  ;;  %v866_v40 = vpop.permute.xlu1 %430  ;;  %v870_v42 = vpop.permute.xlu0 %557 }
  0x97   :  { %276 = vrot.lane.b32.xlu0 %v213_v28, %s737_s2  ;;  %278 = vrot.lane.b32.xlu1 %v214_v29, %s737_s2  ;;  %v868_v41 = vpop.permute.xlu1 %500  ;;  %v874_v44 = vpop.permute.xlu0 %668 }
  0x9b   :  { %280 = vrot.lane.b32.xlu0 %v215_v30, %s737_s2  ;;  %282 = vrot.lane.b32.xlu1 %v216_v31, %s737_s2  ;;  %v872_v43 = vpop.permute.xlu1 %612 }
  0x9f   :  { %331 = vrot.lane.b32.xlu0 %v213_v28, %s738_s20  ;;  %333 = vrot.lane.b32.xlu1 %v214_v29, %s738_s20 }
  0xa3   :  { %335 = vrot.lane.b32.xlu0 %v215_v30, %s738_s20  ;;  %337 = vrot.lane.b32.xlu1 %v216_v31, %s738_s20 }
  0xa7   :  { %390 = vrot.lane.b32.xlu0 %v214_v29, %s739_s21  ;;  %388 = vrot.lane.b32.xlu1 %v213_v28, %s739_s21 }
  0xab   :  { %394 = vrot.lane.b32.xlu0 %v216_v31, %s739_s21  ;;  %392 = vrot.lane.b32.xlu1 %v215_v30, %s739_s21 }
  0xaf   :  { %460 = vrot.lane.b32.xlu0 %v214_v29, %s740_s22  ;;  %458 = vrot.lane.b32.xlu1 %v213_v28, %s740_s22 }
  0xb3   :  { %464 = vrot.lane.b32.xlu0 %v216_v31, %s740_s22  ;;  %462 = vrot.lane.b32.xlu1 %v215_v30, %s740_s22 }
  0xb7   :  { %513 = vrot.lane.b32.xlu0 %v213_v28, %s741_s23  ;;  %515 = vrot.lane.b32.xlu1 %v214_v29, %s741_s23 }
  0xbb   :  { %517 = vrot.lane.b32.xlu0 %v215_v30, %s741_s23  ;;  %519 = vrot.lane.b32.xlu1 %v216_v31, %s741_s23 }
  0xbf   :  { %572 = vrot.lane.b32.xlu0 %v214_v29, %s742_s24  ;;  %570 = vrot.lane.b32.xlu1 %v213_v28, %s742_s24 }
  0xc3   :  { %576 = vrot.lane.b32.xlu0 %v216_v31, %s742_s24  ;;  %574 = vrot.lane.b32.xlu1 %v215_v30, %s742_s24 }
  0xc7   :  { %627 = vrot.lane.b32.xlu0 %v214_v29, %s743_s25  ;;  %625 = vrot.lane.b32.xlu1 %v213_v28, %s743_s25  ;;  %v703_v28 = vsel %vm236_vm1, 1.0, %v744_v52 }
  0xc8   :  { %v411_v54 = vrot.slane %v703_v28, %v821_v22 }
  0xcb   :  { %631 = vrot.lane.b32.xlu0 %v216_v31, %s743_s25  ;;  %629 = vrot.lane.b32.xlu1 %v215_v30, %s743_s25  ;;  %v360_v31 = vrot.slane %v701_v0, %v813_v18 }
  0xcf   :  { %682 = vperm.xlu1 %730, %v679_v37  }
 0x101   :  { %v223_v47 = vpop.permute.xlu0 %222  ;;  %v221_v48 = vpop.permute.xlu1 %220 }
 0x102   :  { %v233_v61 = vsel %vm230_vm5, %v221_v48, %v223_v47 }
 0x103   :  { %v262_v11 = vmul.f32 %v248_v58, %v233_v61 }
 0x105   :  { %v227_v50 = vpop.permute.xlu0 %226  ;;  %v225_v51 = vpop.permute.xlu1 %224  ;;  %v271_v37 = vmul.f32 %v862_v38, %v262_v11 }
 0x106   :  { %v234_v1 = vsel %vm230_vm5, %v227_v50, %v221_v48  ;;  %v232_v7 = vsel %vm230_vm5, %v223_v47, %v225_v51  ;;  %v231_v12 = vsel %vm230_vm5, %v225_v51, %v227_v50  ;;  %v364_v48 = vrot.slane %v701_v0, %v823_v24 }
 0x107   :  { %v261_v15 = vmul.f32 %v244_v59, %v234_v1  ;;  %v263_v20 = vmul.f32 %v252_v60, %v232_v7  ;;  %v264_v29 = vmul.f32 %v256_v2, %v231_v12  ;;  %v415_v12 = vrot.slane %v703_v28, %v813_v18 }
 0x109   :  { %v277_v14 = vpop.permute.xlu0 %276  ;;  %v279_v56 = vpop.permute.xlu1 %278  ;;  %v270_v50 = vmul.f32 %v862_v38, %v261_v15  ;;  %v273_v60 = vmul.f32 %v862_v38, %v264_v29  ;;  %v706_v15 = vsel %vm344_vm3, 1.0, %v744_v52 }
 0x10a   :  { %v287_v57 = vsel %vm284_vm4, %v277_v14, %v279_v56 }
 0x10b   :  { %v313_v3 = vmul.f32 %v299_v55, %v287_v57 }
 0x10d   :  { %v281_v4 = vpop.permute.xlu0 %280  ;;  %v283_v6 = vpop.permute.xlu1 %282  ;;  %v322_v21 = vmul.f32 %v849_v27, %v313_v3 }
 0x10e   :  { %v286_v8 = vsel %vm284_vm4, %v279_v56, %v281_v4  ;;  %v285_v9 = vsel %vm284_vm4, %v281_v4, %v283_v6  ;;  %v288_v10 = vsel %vm284_vm4, %v283_v6, %v277_v14  ;;  %v272_v14 = vmul.f32 %v862_v38, %v263_v20 }
 0x10f   :  { %v314_v17 = vmul.f32 %v303_v62, %v286_v8  ;;  %v312_v19 = vmul.f32 %v295_v63, %v288_v10  ;;  %v315_v23 = vmul.f32 %v307_v5, %v285_v9  ;;  %v326_v55 = vadd.f32 %v322_v21, %v271_v37 }
 0x110   :  { %v407_v5 = vrot.slane %v703_v28, %v811_v16 }
 0x111   :  { %v332_v25 = vpop.permute.xlu0 %331  ;;  %v334_v26 = vpop.permute.xlu1 %333  ;;  %v323_v51 = vmul.f32 %v849_v27, %v314_v17  ;;  %v321_v53 = vmul.f32 %v849_v27, %v312_v19  ;;  %v324_v56 = vmul.f32 %v849_v27, %v315_v23 }
 0x112   :  { %v342_v30 = vsel %vm339_vm7, %v332_v25, %v334_v26 }
 0x113   :  { %v370_v47 = vmul.f32 %v356_v13, %v342_v30  ;;  %v327_v27 = vadd.f32 %v323_v51, %v272_v14  ;;  %v325_v4 = vadd.f32 %v321_v53, %v270_v50  ;;  %v328_v6 = vadd.f32 %v324_v56, %v273_v60 }
 0x114   :  { %v419_v13 = vrot.slane %v703_v28, %v823_v24  ;;  %v477_v30 = vrot.slane %v706_v15, %v811_v16 }
 0x115   :  { %v379_v57 = vmul.f32 %v864_v39, %v370_v47  ;;  %v336_v58 = vpop.permute.xlu0 %335  ;;  %v338_v59 = vpop.permute.xlu1 %337 }
 0x116   :  { %v341_v61 = vsel %vm339_vm7, %v334_v26, %v336_v58  ;;  %v340_v62 = vsel %vm339_vm7, %v336_v58, %v338_v59  ;;  %v343_v63 = vsel %vm339_vm7, %v338_v59, %v332_v25  ;;  %v485_v58 = vrot.slane %v706_v15, %v813_v18 }
 0x117   :  { %v383_v0 = vadd.f32 %v379_v57, %v326_v55  ;;  %v371_v1 = vmul.f32 %v360_v31, %v341_v61  ;;  %v369_v2 = vmul.f32 %v352_v32, %v343_v63  ;;  %v372_v3 = vmul.f32 %v364_v48, %v340_v62 }
 0x118   :  { %v489_v48 = vrot.slane %v706_v15, %v823_v24  ;;  %v481_v57 = vrot.slane %v706_v15, %v821_v22  ;;  %v708_v59 = vsel %vm527_vm11, 1.0, %v744_v52 }
 0x119   :  { %v380_v38 = vmul.f32 %v864_v39, %v371_v1  ;;  %v378_v7 = vmul.f32 %v864_v39, %v369_v2  ;;  %v381_v8 = vmul.f32 %v864_v39, %v372_v3  ;;  %v391_v9 = vpop.permute.xlu0 %390  ;;  %v389_v10 = vpop.permute.xlu1 %388  ;;  %v542_v15 = vrot.slane %v708_v59, %v813_v18 }
 0x11a   :  { %v399_v11 = vsel %vm396_vm8, %v389_v10, %v391_v9 }
 0x11b   :  { %v384_v17 = vadd.f32 %v380_v38, %v327_v27  ;;  %v382_v19 = vadd.f32 %v378_v7, %v325_v4  ;;  %v385_v20 = vadd.f32 %v381_v8, %v328_v6  ;;  %v425_v21 = vmul.f32 %v411_v54, %v399_v11 }
 0x11c   :  { %v534_v6 = vrot.slane %v708_v59, %v811_v16 }
 0x11d   :  { %v434_v39 = vmul.f32 %v866_v40, %v425_v21  ;;  %v395_v23 = vpop.permute.xlu0 %394  ;;  %v393_v25 = vpop.permute.xlu1 %392 }
 0x11e   :  { %v400_v26 = vsel %vm396_vm8, %v395_v23, %v389_v10  ;;  %v397_v28 = vsel %vm396_vm8, %v393_v25, %v395_v23  ;;  %v398_v29 = vsel %vm396_vm8, %v391_v9, %v393_v25 }
 0x11f   :  { %v438_v31 = vadd.f32 %v434_v39, %v383_v0  ;;  %v424_v32 = vmul.f32 %v407_v5, %v400_v26  ;;  %v426_v37 = vmul.f32 %v415_v12, %v398_v29  ;;  %v427_v47 = vmul.f32 %v419_v13, %v397_v28 }
 0x120   :  { %v538_v12 = vrot.slane %v708_v59, %v821_v22 }
 0x121   :  { %v433_v50 = vmul.f32 %v866_v40, %v424_v32  ;;  %v435_v51 = vmul.f32 %v866_v40, %v426_v37  ;;  %v436_v53 = vmul.f32 %v866_v40, %v427_v47  ;;  %v461_v54 = vpop.permute.xlu0 %460  ;;  %v459_v14 = vpop.permute.xlu1 %458  ;;  %v453_v55 = vadd.f32 %v853_v34, %v438_v31 }
 0x122   :  { %v469_v56 = vsel %vm466_vm10, %v459_v14, %v461_v54 }
 0x123   :  { %v437_v60 = vadd.f32 %v433_v50, %v382_v19  ;;  %v439_v61 = vadd.f32 %v435_v51, %v384_v17  ;;  %v440_v62 = vadd.f32 %v436_v53, %v385_v20  ;;  %v494_v63 = vmul.f32 %v477_v30, %v469_v56 }
 0x124   :  { %v546_v17 = vrot.slane %v708_v59, %v823_v24  ;;  %v710_v19 = vsel %vm526_vm9, 1.0, %v744_v52  ;;  %v645_v52 = vrot.slane %v712_v45, %v811_v16 }
 0x125   :  { %v452_v40 = vadd.f32 %v851_v33, %v437_v60  ;;  %v503_v0 = vmul.f32 %v868_v41, %v494_v63  ;;  %v465_v34 = vpop.permute.xlu0 %464  ;;  %v455_v1 = vadd.f32 %v857_v36, %v440_v62  ;;  %v454_v2 = vadd.f32 %v855_v35, %v439_v61  ;;  %v463_v3 = vpop.permute.xlu1 %462 }
 0x126   :  { %v470_v27 = vsel %vm466_vm10, %v465_v34, %v459_v14  ;;  %v467_v4 = vsel %vm466_vm10, %v463_v3, %v465_v34  ;;  %v468_v5 = vsel %vm466_vm10, %v461_v54, %v463_v3  ;;  %v589_v31 = vrot.slane %v710_v19, %v811_v16 }
 0x127   :  { %v507_v33 = vadd.f32 %v503_v0, %v452_v40  ;;  %v497_v38 = vmul.f32 %v489_v48, %v470_v27  ;;  %v495_v7 = vmul.f32 %v481_v57, %v468_v5  ;;  %v496_v8 = vmul.f32 %v485_v58, %v467_v4 }
 0x128   :  { %v593_v57 = vrot.slane %v710_v19, %v821_v22  ;;  %v597_v46 = vrot.slane %v710_v19, %v813_v18  ;;  %v653_v16 = vrot.slane %v712_v45, %v813_v18 }
 0x129   :  { %v506_v36 = vmul.f32 %v868_v41, %v497_v38  ;;  %v504_v35 = vmul.f32 %v868_v41, %v495_v7  ;;  %v505_v9 = vmul.f32 %v868_v41, %v496_v8  ;;  %v514_v10 = vpop.permute.xlu0 %513  ;;  %v516_v11 = vpop.permute.xlu1 %515  ;;  %v657_v8 = vrot.slane %v712_v45, %v823_v24 }
 0x12a   :  { %v524_v13 = vsel %vm521_vm12, %v514_v10, %v516_v11 }
 0x12b   :  { %v510_v20 = vadd.f32 %v506_v36, %v455_v1  ;;  %v508_v21 = vadd.f32 %v504_v35, %v453_v55  ;;  %v509_v39 = vadd.f32 %v505_v9, %v454_v2  ;;  %v551_v23 = vmul.f32 %v534_v6, %v524_v13 }
 0x12c   :  { %v601_v55 = vrot.slane %v710_v19, %v823_v24  ;;  %v649_v36 = vrot.slane %v712_v45, %v821_v22 }
 0x12d   :  { %v560_v41 = vmul.f32 %v870_v42, %v551_v23  ;;  %v518_v25 = vpop.permute.xlu0 %517  ;;  %v520_v26 = vpop.permute.xlu1 %519 }
 0x12e   :  { %v523_v28 = vsel %vm521_vm12, %v516_v11, %v518_v25  ;;  %v522_v29 = vsel %vm521_vm12, %v518_v25, %v520_v26  ;;  %v525_v30 = vsel %vm521_vm12, %v520_v26, %v514_v10 }
 0x12f   :  { %v564_v32 = vadd.f32 %v560_v41, %v507_v33  ;;  %v552_v37 = vmul.f32 %v538_v12, %v523_v28  ;;  %v553_v47 = vmul.f32 %v542_v15, %v522_v29  ;;  %v554_v48 = vmul.f32 %v546_v17, %v525_v30 }
 0x131   :  { %v561_v50 = vmul.f32 %v870_v42, %v552_v37  ;;  %v562_v51 = vmul.f32 %v870_v42, %v553_v47  ;;  %v563_v53 = vmul.f32 %v870_v42, %v554_v48  ;;  %v573_v54 = vpop.permute.xlu0 %572  ;;  %v571_v14 = vpop.permute.xlu1 %570 }
 0x132   :  { %v581_v56 = vsel %vm578_vm13, %v571_v14, %v573_v54 }
 0x133   :  { %v565_v58 = vadd.f32 %v561_v50, %v508_v21  ;;  %v566_v59 = vadd.f32 %v562_v51, %v509_v39  ;;  %v567_v60 = vadd.f32 %v563_v53, %v510_v20  ;;  %v606_v61 = vmul.f32 %v589_v31, %v581_v56 }
 0x135   :  { %v615_v62 = vmul.f32 %v872_v43, %v606_v61  ;;  %v577_v42 = vpop.permute.xlu0 %576  ;;  %v575_v63 = vpop.permute.xlu1 %574 }
 0x136   :  { %v582_v40 = vsel %vm578_vm13, %v577_v42, %v571_v14  ;;  %v579_v0 = vsel %vm578_vm13, %v575_v63, %v577_v42  ;;  %v580_v34 = vsel %vm578_vm13, %v573_v54, %v575_v63 }
 0x137   :  { %v619_v1 = vadd.f32 %v615_v62, %v564_v32  ;;  %v609_v2 = vmul.f32 %v601_v55, %v582_v40  ;;  %v607_v3 = vmul.f32 %v593_v57, %v580_v34  ;;  %v608_v27 = vmul.f32 %v597_v46, %v579_v0 }
 0x139   :  { %v618_v4 = vmul.f32 %v872_v43, %v609_v2  ;;  %v616_v5 = vmul.f32 %v872_v43, %v607_v3  ;;  %v617_v6 = vmul.f32 %v872_v43, %v608_v27  ;;  %v628_v33 = vpop.permute.xlu0 %627  ;;  %v626_v38 = vpop.permute.xlu1 %625 }
 0x13a   :  { %v636_v7 = vsel %vm633_vm15, %v626_v38, %v628_v33 }
 0x13b   :  { %v622_v35 = vadd.f32 %v618_v4, %v567_v60  ;;  %v620_v9 = vadd.f32 %v616_v5, %v565_v58  ;;  %v621_v10 = vadd.f32 %v617_v6, %v566_v59  ;;  %v662_v11 = vmul.f32 %v645_v52, %v636_v7 }
 0x13d   :  { %v671_v12 = vmul.f32 %v874_v44, %v662_v11  ;;  %v632_v13 = vpop.permute.xlu0 %631  ;;  %v630_v15 = vpop.permute.xlu1 %629 }
 0x13e   :  { %v637_v43 = vsel %vm633_vm15, %v632_v13, %v626_v38  ;;  %v634_v17 = vsel %vm633_vm15, %v630_v15, %v632_v13  ;;  %v635_v24 = vsel %vm633_vm15, %v628_v33, %v630_v15 }
 0x13f   :  { %v665_v22 = vmul.f32 %v657_v8, %v637_v43  ;;  %v663_v19 = vmul.f32 %v649_v36, %v635_v24  ;;  %v664_v18 = vmul.f32 %v653_v16, %v634_v17  ;;  %v675_v20 = vadd.f32 %v671_v12, %v619_v1 }
 0x141   :  { %v674_v21 = vmul.f32 %v874_v44, %v665_v22  ;;  %v672_v39 = vmul.f32 %v874_v44, %v663_v19  ;;  %v673_v23 = vmul.f32 %v874_v44, %v664_v18 }
 0x143   :  { %v676_v41 = vadd.f32 %v672_v39, %v620_v9  ;;  %v677_v25 = vadd.f32 %v673_v23, %v621_v10  ;;  %v678_v26 = vadd.f32 %v674_v21, %v622_v35 }
 0x14e   :  { %v683_v28 = vpop.permute.xlu1 %682 }
 0x14f   :  { %v685_v29 = vadd.f32 %v683_v28, %v675_v20  ;;  %v686_v30 = vadd.f32 %v683_v28, %v676_v41  ;;  %v687_v31 = vadd.f32 %v683_v28, %v677_v25  ;;  %v688_v32 = vadd.f32 %v683_v28, %v678_v26 }
 0x151   :  { %689 = vst [vmem:[%s1083_s6] sm:$0xff] %v685_v29  ;;  %690 = vst [vmem:[%s1083_s6 + $0x8] sm:$0xff] %v686_v30 }
 0x152   :  { %691 = vst [vmem:[%s1083_s6 + $0x10] sm:$0xff] %v687_v31  ;;  %692 = vst [vmem:[%s1083_s6 + $0x18] sm:$0xff] %v688_v32 }

</bundles_post_ra>
